<compile_context>
chip_gen: v6e
topology: v6e:2x2x1
jax: 0.10.0
libtpu: 0.0.40
codegen_flags: <defaults>
</compile_context>

<pallas_src>
import jax
import jax.numpy as jnp
from jax import lax
from jax.experimental import pallas as pl
from jax.experimental.pallas import tpu as pltpu

_MATMUL_DTYPE = jnp.bfloat16


# ---------------------------------------------------------------------------
# VMEM-aware tile sizing
# ---------------------------------------------------------------------------
def _vmem_capacity_bytes(default=64 * 1024 * 1024):
    try:
        info = pltpu.get_tpu_info()
        for name in ("vmem_capacity_bytes", "vmem_size_bytes", "vmem_bytes"):
            v = getattr(info, name, None)
            if v:
                return int(v)
    except Exception:
        pass
    return default  # v7x-safe fallback


def _vmem_limits():
    cap = _vmem_capacity_bytes()
    vmem_limit = min((cap * 3) // 4, 96 * 1024 * 1024)   # ~96 MB on v5e/v6e, ~48 MB on v7x
    tile_budget = min(vmem_limit // 2, 28 * 1024 * 1024)  # double-buffered tiles stay well inside
    return vmem_limit, tile_budget


def _pick_bank_tile(n_train, d, n_concepts):
    _, tile_budget = _vmem_limits()
    # per bank row, per pipeline step: 2x bank tile (bf16) + 2x tnorm (f32) + 2x score out (f32)
    per_row = 2 * (2 * d) + 2 * 4 + 2 * 4 * n_concepts
    tn = max(128, (tile_budget // per_row) // 128 * 128)
    tn = min(tn, 8192)                                    # multi-MB tiles already hit ~HBM roofline
    if n_train <= tn:
        tn = max(128, pl.cdiv(n_train, 128) * 128)        # single tile covering the (padded) bank
    return tn


# ---------------------------------------------------------------------------
# One-time bank preprocessing (cache the results across forward calls):
# bf16 cast for the MXU, f32 row norms for ranking, padding to a tile multiple.
# ---------------------------------------------------------------------------
def preprocess_bank(train_bank, n_concepts, matmul_dtype=_MATMUL_DTYPE):
    n_train, d = train_bank.shape
    tn = _pick_bank_tile(n_train, d, n_concepts)
    n_pad = pl.cdiv(n_train, tn) * tn
    bank_f32 = train_bank.astype(jnp.float32)
    tnorm = jnp.sum(bank_f32 * bank_f32, axis=1)[None, :]            # (1, N) f32
    bank_mm = train_bank.astype(matmul_dtype)
    if n_pad != n_train:
        sentinel = float(jnp.finfo(jnp.float32).max) / 4.0           # padded rows never win top-k
        bank_mm = jnp.pad(bank_mm, ((0, n_pad - n_train), (0, 0)))
        tnorm = jnp.pad(tnorm, ((0, 0), (0, n_pad - n_train)), constant_values=sentinel)
    return bank_mm, tnorm, tn


# ---------------------------------------------------------------------------
# Kernel 1: fused classifier head.
#   [orig | y_pred] = x @ [W | W2] + [b | b]    (single MXU matmul per batch tile)
# ---------------------------------------------------------------------------
def _pred_kernel(x_ref, w_ref, b_ref, out_ref):
    out_ref[...] = jnp.dot(x_ref[...], w_ref[...],
                           preferred_element_type=jnp.float32) + b_ref[...]


# ---------------------------------------------------------------------------
# Kernel 2: concept<->bank ranking scores, lane-dense (K, TN) output.
#   score[k, n] = ||t_n||^2 - 2 * (c_k . t_n)
# (sqrt is monotone and ||c_k||^2 is constant per concept row, so per-row top-k
#  over `score` matches top-k over true distances.)
# ---------------------------------------------------------------------------
def _score_kernel(t_ref, ct_ref, tnorm_ref, score_ref):
    dots = lax.dot_general(ct_ref[...], t_ref[...], (((1,), (1,)), ((), ())),
                           preferred_element_type=jnp.float32)       # (K, TN) on the MXU
    score_ref[...] = tnorm_ref[...] - 2.0 * dots                     # free VPU epilogue


# ---------------------------------------------------------------------------
# Wrapper implementing ConceptNet.forward(train_embedding, h_x, topk)
# ---------------------------------------------------------------------------
def concept_net_forward(train_embedding, concept, bank_mm, bank_tnorm, bank_tile,
                        w_h, b_h, topk, matmul_dtype=_MATMUL_DTYPE):
    bs, d = train_embedding.shape
    n_concepts = concept.shape[1]
    n_pad = bank_mm.shape[0]
    n_classes = w_h.shape[1]
    vmem_limit, _ = _vmem_limits()

    concept_f32 = concept.astype(jnp.float32)
    w_f32 = w_h.astype(jnp.float32)
    b_f32 = b_h.astype(jnp.float32)

    # --- tiny (K, K) gram + metrics: JAX glue (sub-us of work, not worth a kernel launch).
    gram = concept_f32.T @ concept_f32
    eye = jnp.eye(n_concepts, dtype=jnp.float32)
    l_sparse_2 = jnp.mean(gram * (1.0 - eye))
    norm_metrics = jnp.mean(gram * eye)

    # --- fold the rank-K projection into the head weight.
    # TODO(synk): torch.inverse has no Pallas TPU primitive; tiny (K, K) solve in JAX glue.
    w2 = concept_f32 @ jnp.linalg.solve(gram, concept_f32.T @ w_f32)      # (D, n_classes)
    wcat = jnp.concatenate([w_f32, w2], axis=1).astype(matmul_dtype)      # (D, 2C)
    bcat = jnp.concatenate([b_f32, b_f32], axis=1)                        # (1, 2C) f32

    # --- fused head (Pallas), tiled over bs -------------------------------
    tb = min(bs, 1024)
    bs_pad = pl.cdiv(bs, tb) * tb
    x_mm = train_embedding.astype(matmul_dtype)
    if bs_pad != bs:
        x_mm = jnp.pad(x_mm, ((0, bs_pad - bs), (0, 0)))
    preds = pl.pallas_call(
        _pred_kernel,
        out_shape=jax.ShapeDtypeStruct((bs_pad, 2 * n_classes), jnp.float32),
        grid=(bs_pad // tb,),
        in_specs=[
            pl.BlockSpec((tb, d), lambda i: (i, 0)),
            pl.BlockSpec((d, 2 * n_classes), lambda i: (0, 0)),
            pl.BlockSpec((1, 2 * n_classes), lambda i: (0, 0)),
        ],
        out_specs=pl.BlockSpec((tb, 2 * n_classes), lambda i: (i, 0)),
        compiler_params=pltpu.CompilerParams(dimension_semantics=("parallel",)),
    )(x_mm, wcat, bcat)
    orig_pred = preds[:bs, :n_classes]
    y_pred = preds[:bs, n_classes:]

    # --- concept<->bank ranking scores (Pallas), streamed over the cached bank
    ct_mm = concept_f32.T.astype(matmul_dtype)                            # (K, D), resident
    grid_n = n_pad // bank_tile
    itemsize = jnp.dtype(matmul_dtype).itemsize
    cost = pl.CostEstimate(
        flops=2 * n_pad * d * n_concepts + n_pad * n_concepts,
        transcendentals=0,
        bytes_accessed=int(n_pad * d * itemsize + n_concepts * d * itemsize
                           + n_pad * 4 + n_concepts * n_pad * 4),
    )
    score = pl.pallas_call(
        _score_kernel,
        out_shape=jax.ShapeDtypeStruct((n_concepts, n_pad), jnp.float32),
        grid=(grid_n,),
        in_specs=[
            pl.BlockSpec((bank_tile, d), lambda i: (i, 0)),
            pl.BlockSpec((n_concepts, d), lambda i: (0, 0)),              # resident across grid
            pl.BlockSpec((1, bank_tile), lambda i: (0, i)),
        ],
        out_specs=pl.BlockSpec((n_concepts, bank_tile), lambda i: (0, i)),  # lane-dense: N on lanes
        compiler_params=pltpu.CompilerParams(
            dimension_semantics=("parallel",),
            vmem_limit_bytes=vmem_limit),
        cost_estimate=cost,
    )(bank_mm, ct_mm, bank_tnorm)

    # TODO(synk): top-k (sort) + gather have no clean Pallas equivalent; JAX glue on (K, N).
    _, knn_idx = lax.top_k(-score, topk)                                  # smallest distances
    tnorm_knn = bank_tnorm[0][knn_idx]                                    # (K, topk)
    score_knn = jnp.take_along_axis(score, knn_idx, axis=1)               # (K, topk)
    knn_dots = 0.5 * (tnorm_knn - score_knn)                              # c_k . t_idx
    l_sparse_1 = jnp.mean(jnp.sum(knn_dots, axis=1) / topk)

    return orig_pred, y_pred, l_sparse_1, l_sparse_2, [norm_metrics]


if __name__ == "__main__":
    key = jax.random.PRNGKey(0)
    k1, k2, k3, k4, k5 = jax.random.split(key, 5)

    bs, d, n_concepts, n_train, n_classes, topk = 8, 128, 4, 1024, 8, 5

    # Training-set embedding bank (module's self.train_embeddings, kept as (N, D)).
    train_bank = jax.random.normal(k1, (n_train, d), dtype=jnp.float32)
    # Current batch of embeddings.
    train_embedding = jax.random.normal(k2, (bs, d), dtype=jnp.float32)
    # concept parameter: uniform(-0.5, 0.5) over (embedding_dim, n_concepts) as init_concept.
    concept = jax.random.uniform(k3, (d, n_concepts), minval=-0.5, maxval=0.5,
                                 dtype=jnp.float32)
    # Deterministic linear classifier standing in for the frozen head h_x.
    w_h = 0.1 * jax.random.normal(k4, (d, n_classes), dtype=jnp.float32)
    b_h = 0.1 * jax.random.normal(k5, (1, n_classes), dtype=jnp.float32)

    # One-time (cached across forward calls): bf16 cast, f32 row norms, tile padding.
    bank_mm, bank_tnorm, bank_tile = preprocess_bank(train_bank, n_concepts)

    orig_pred, y_pred, l1, l2, metrics = concept_net_forward(
        train_embedding, concept, bank_mm, bank_tnorm, bank_tile, w_h, b_h, topk)
    jax.block_until_ready((orig_pred, y_pred, l1, l2, metrics[0]))

    assert orig_pred.shape == (bs, n_classes)
    assert y_pred.shape == (bs, n_classes)
    assert l1.shape == () and l2.shape == () and metrics[0].shape == ()
    assert bool(jnp.all(jnp.isfinite(orig_pred))) and bool(jnp.all(jnp.isfinite(y_pred)))
    print("KERNEL_OK")
</pallas_src>

<mosaic_0001>
module attributes {stable_mosaic.version = 11 : i64} {
  func.func @_pred_kernel(%arg0: i32, %arg1: memref<8x128xbf16, #tpu.memory_space<vmem>>, %arg2: memref<128x16xbf16, #tpu.memory_space<vmem>>, %arg3: memref<1x16xf32, #tpu.memory_space<vmem>>, %arg4: memref<8x16xf32, #tpu.memory_space<vmem>>) attributes {dimension_semantics = [#tpu.dimension_semantics<parallel>], iteration_bounds = array<i64: 1>, scalar_prefetch = 0 : i64, scratch_operands = 0 : i64, tpu.core_type = #tpu.core_type<tc>, window_params = [{transform_indices = @transform_0, window_bounds = array<i64: 8, 128>}, {pipeline_mode = #tpu.pipeline_mode<synchronous>, transform_indices = @transform_1, window_bounds = array<i64: 128, 16>}, {pipeline_mode = #tpu.pipeline_mode<synchronous>, transform_indices = @transform_2, window_bounds = array<i64: 1, 16>}, {transform_indices = @transform_3, window_bounds = array<i64: 8, 16>}]} {
    %c0 = arith.constant 0 : index
    %c0_0 = arith.constant 0 : index
    %0 = vector.load %arg1[%c0, %c0_0] : memref<8x128xbf16, #tpu.memory_space<vmem>>, vector<8x128xbf16>
    %c0_1 = arith.constant 0 : index
    %c0_2 = arith.constant 0 : index
    %1 = vector.load %arg2[%c0_1, %c0_2] : memref<128x16xbf16, #tpu.memory_space<vmem>>, vector<128x16xbf16>
    %cst = arith.constant dense<0.000000e+00> : vector<8x16xf32>
    %2 = tpu.matmul %0, %1, %cst {dimension_numbers = #tpu.dot_dimension_numbers<[1], [0], [0], [1], [0, 0, 1, 1], [], []>} : vector<8x128xbf16>, vector<128x16xbf16>, vector<8x16xf32> -> vector<8x16xf32>
    %c0_3 = arith.constant 0 : index
    %c0_4 = arith.constant 0 : index
    %3 = vector.load %arg3[%c0_3, %c0_4] : memref<1x16xf32, #tpu.memory_space<vmem>>, vector<1x16xf32>
    %4 = vector.broadcast %3 : vector<1x16xf32> to vector<8x16xf32>
    %5 = arith.addf %2, %4 : vector<8x16xf32>
    %c0_5 = arith.constant 0 : index
    %c0_6 = arith.constant 0 : index
    %6 = vector.load %arg4[%c0_5, %c0_6] : memref<8x16xf32, #tpu.memory_space<vmem>>, vector<8x16xf32>
    tpu.vector_store %arg4[%c0_5, %c0_6], %5 {strides = array<i32>} : memref<8x16xf32, #tpu.memory_space<vmem>>, vector<8x16xf32>,
    return
  }
  func.func @transform_0(%arg0: i32) -> (i32, i32) {
    %c0_i32 = arith.constant 0 : i32
    %c0_i32_0 = arith.constant 0 : i32
    return %arg0, %c0_i32 : i32, i32
  }
  func.func @transform_1(%arg0: i32) -> (i32, i32) {
    %c0_i32 = arith.constant 0 : i32
    %c0_i32_0 = arith.constant 0 : i32
    %c0_i32_1 = arith.constant 0 : i32
    return %c0_i32, %c0_i32_0 : i32, i32
  }
  func.func @transform_2(%arg0: i32) -> (i32, i32) {
    %c0_i32 = arith.constant 0 : i32
    %c0_i32_0 = arith.constant 0 : i32
    %c0_i32_1 = arith.constant 0 : i32
    return %c0_i32, %c0_i32_0 : i32, i32
  }
  func.func @transform_3(%arg0: i32) -> (i32, i32) {
    %c0_i32 = arith.constant 0 : i32
    %c0_i32_0 = arith.constant 0 : i32
    return %arg0, %c0_i32 : i32, i32
  }
}

</mosaic_0001>

<bundles_post_ra>
// kernel: tpu_custom_call.1
= control target key start
LH: loop header
LB: loop body
LE: loop exit
PB: predicated region body
PF: predicated region fallthrough
CT: control target
= control target key end

     0   :  { %v215_v1 = vmov 0.0   ;;  %vm216_vm0 = vmmov 0   ;;  %s271_s0 = inlined_call_operand.vmem [shape: bf16[8,128], index: 0, kind: input, shape index: {}]   ;;  %s272_s1 = inlined_call_operand.vmem [shape: bf16[128,16], index: 1, kind: input, shape index: {}]   ;;  %s273_s2 = inlined_call_operand.vmem [shape: f32[1,16], index: 2, kind: input, shape index: {}]   ;;  %s274_s3 = inlined_call_operand.hbm [shape: f32[8,16], index: 3, kind: output, shape index: {}]  }
   0x1   :  { %v185_v0 = vld [vmem:[%s272_s1 + $0x38] sm:$0xff]   ;;  %162 = vmatprep.subr.bf16.mxu0 %v215_v1  ;;  %v186_v2 = vld [vmem:[%s272_s1 + $0x30] sm:$0xff]   ;;  %178 = vmatprep.mubr.msk.bf16.mxu0 %vm216_vm0, %v215_v1  ;;  %v187_v3 = vld [vmem:[%s272_s1 + $0x28] sm:$0xff]  }
   0x2   :  { %163 = vmatpush3.bf16.msra.mxu0 %v185_v0 }
   0x3   :  { %164 = vmatprep.subr.bf16.mxu0 %v215_v1 }
   0x6   :  { %165 = vmatpush3.bf16.msra.mxu0 %v186_v2 }
   0x7   :  { %166 = vmatprep.subr.bf16.mxu0 %v215_v1 }
   0x8   :  { %8 = vsyncpa [#allocation3], 0  ;;  %v188_v4 = vld [vmem:[%s272_s1 + $0x20] sm:$0xff]   ;;  %v189_v5 = vld [vmem:[%s272_s1 + $0x18] sm:$0xff]   ;;  %s217_s5 = smov [#allocation2]   ;;  %vm128_vm1 = vcmask 130048  }
   0x9   :  { %v190_v6 = vld [vmem:[%s272_s1 + $0x10] sm:$0xff]   ;;  %v191_v7 = vld [vmem:[%s272_s1 + $0x8] sm:$0xff]   ;;  %v192_v8 = vld [vmem:[%s272_s1] sm:$0xff]   ;;  %s136_s6 = sshll.u32 %s217_s5, 4  ;;  %s137_s6 = int_to_ptr.vmem [resolvable:$true] %s136_s6 }
   0xa   :  { %167 = vmatpush3.bf16.msra.mxu0 %v187_v3  ;;  %v16_v9 = vld [vmem:[%s271_s0] sm:$0xf]  ;;  %s193_s1 = scalar_lea.vmem %s137_s6, 128  ;;  %p198_p1 = scmp.lt.s32.totalorder %s137_s6, %s137_s6 }
   0xb   :  { %168 = vmatprep.subr.bf16.mxu0 %v215_v1  ;;  %v144_v10 = vld [vmem:[%s273_s2] ss:$0 sm:$0xff]  ;;  %p194_p0 = scmp.ne.s32.totalorder %s137_s6, %s193_s1  ;;  %p199_p2 = scmp.lt.s32.totalorder %s193_s1, %s193_s1 }
   0xd   :  { %p200_p3 = por %p199_p2, %p198_p1 }
   0xe   :  { %169 = vmatpush3.bf16.msra.mxu0 %v188_v4 }
   0xf   :  { %170 = vmatprep.subr.bf16.mxu0 %v215_v1  ;;  %p201_p4 = pnand %p200_p3, %p194_p0 }
  0x12   :  { %171 = vmatpush3.bf16.msra.mxu0 %v189_v5 }
  0x13   :  { %172 = vmatprep.subr.bf16.mxu0 %v215_v1 }
  0x16   :  { %173 = vmatpush3.bf16.msra.mxu0 %v190_v6 }
  0x17   :  { %174 = vmatprep.subr.bf16.mxu0 %v215_v1 }
  0x1a   :  { %175 = vmatpush3.bf16.msra.mxu0 %v191_v7 }
  0x1b   :  { %176 = vmatprep.subr.bf16.mxu0 %v215_v1 }
  0x1e   :  { %177 = vmatpush3.bf16.msra.mxu0 %v192_v8 }
  0x21   :  { %179 = vmatmul.mubr.bf16.vlgmr.msra.gmra.mxu0 %v16_v9 }
  0xe1   :  { %v122_v11 = vpop.f32.mrf.mxu0 }
  0xe2   :  { %v123_v12 = vadd.f32 %v144_v10, %v122_v11 }
  0xe3   :  { %v180_v13 = vpop.f32.mrf.mxu0 }
  0xe4   :  { %129 = vst.msk [vmem:[#allocation2] sm:$0xff] %vm128_vm1, %v123_v12 }
  0xe5   :  { %v125_v14 = vpop.f32.mrf.mxu0 }
  0xe6   :  { %204 = shalt.err (!%p201_p4)
}
  0xe7   :  { %139 = dma.vmem_to_hbm [thread:$0]  %s137_s6, 128, %s274_s3, [#allocation3]   ;;  %v181_v15 = vpop.f32.mrf.mxu0 }
  0xe8   :  { %213 = dma.done.wait [#allocation3], 128  }
  0xe9   :  { %214 = vsyncadd [#allocation3], 4294967168 }
  0xea   :  { %143 = vsyncpa [#allocation3], 1 }

</bundles_post_ra>
